<compile_context>
chip_gen: v7x
topology: tpu7x:2x2x1
jax: 0.10.0
libtpu: 0.0.40
codegen_flags: <defaults>
</compile_context>

<pallas_src>
import functools

import jax
import jax.numpy as jnp
from jax.experimental import pallas as pl
from jax.experimental.pallas import tpu as pltpu


def mlp_kernel(x_ref, w_ref, b_ref, o_ref):
    # x_ref: (1, TB)   w_ref: (4, 16, 16) padded   b_ref: (4, 16, 1) padded
    x = x_ref[...]                                   # (1, TB), already f32

    # Layer 1: in_features == 1 -> pure VPU broadcast FMA (no wasted MXU pass).
    w1 = w_ref[0][:, 0:1]                            # (16, 1)
    b1 = b_ref[0]                                    # (16, 1)
    h = jnp.maximum(w1 * x + b1, 0.0)                # (16, TB)

    # Layer 2: MXU, lane-dense result.
    w2 = w_ref[1]                                    # (16, 16)
    h = jnp.maximum(
        jnp.dot(w2, h, preferred_element_type=jnp.float32) + b_ref[1], 0.0)

    # Layer 3
    w3 = w_ref[2]
    h = jnp.maximum(
        jnp.dot(w3, h, preferred_element_type=jnp.float32) + b_ref[2], 0.0)

    # Layer 4 (no ReLU)
    w4 = w_ref[3][0:2, :]                            # (2, 16)
    b4 = b_ref[3][0:2, :]                            # (2, 1)
    o_ref[...] = (jnp.dot(w4, h, preferred_element_type=jnp.float32)
                  + b4).astype(o_ref.dtype)          # (2, TB) lane-dense store


def _round_up(x, m):
    return ((x + m - 1) // m) * m


@functools.partial(jax.jit, static_argnames=("max_tb", "num_tiles_hint"))
def net_forward(x, params, *, max_tb=16384, num_tiles_hint=2):
    """x: (B, 1) float32. Returns (B, 2) float32.

    Tile choice (static, derived from the static shape B):
      - aim for >= num_tiles_hint tiles so both v7x TensorCores get work,
      - tiles are multiples of 512 lanes,
      - capped at max_tb so the live (16, TB) f32 temporaries + double-buffered
        x/out blocks stay comfortably inside v7x's 64 MiB VMEM.
    """
    B = x.shape[0]
    tb = _round_up(max(1, pl.cdiv(B, num_tiles_hint)), 512)
    tb = max(512, min(tb, max_tb))
    n_blocks = max(1, pl.cdiv(B, tb))
    b_pad = n_blocks * tb

    x_t = x.astype(jnp.float32).T                    # (1, B) -- free reshape
    if b_pad != B:
        # Only pay the pad pass when B is not tile-aligned.
        x_t = jnp.pad(x_t, ((0, 0), (0, b_pad - B)))  # (1, b_pad)

    out_t = pl.pallas_call(
        mlp_kernel,
        out_shape=jax.ShapeDtypeStruct((2, b_pad), jnp.float32),
        grid=(n_blocks,),
        in_specs=[
            pl.BlockSpec((1, tb), lambda i: (0, i)),          # x tile per step
            pl.BlockSpec((4, 16, 16), lambda i: (0, 0, 0)),   # weights, resident
            pl.BlockSpec((4, 16, 1), lambda i: (0, 0, 0)),    # biases, resident
        ],
        out_specs=pl.BlockSpec((2, tb), lambda i: (0, i)),
        compiler_params=pltpu.CompilerParams(
            dimension_semantics=("parallel",),
            vmem_limit_bytes=48 * 1024 * 1024),
    )(x_t, params["w_stack"], params["b_stack"])

    # Slice+transpose stay inside this jit so XLA fuses them with the consumer
    # instead of materializing a standalone transpose pass over the output.
    return out_t[:, :B].T                                     # (B, 2)


def init_params(key):
    """Mimic PyTorch nn.Linear default init (uniform +-1/sqrt(fan_in)).
    Weights stored (out, in); also build the packed blocks the kernel uses."""
    dims = [(1, 16), (16, 16), (16, 16), (16, 2)]  # (fan_in, fan_out)
    params = {}
    keys = jax.random.split(key, 2 * len(dims))
    for i, (fin, fout) in enumerate(dims):
        bound = 1.0 / (fin ** 0.5)
        w = jax.random.uniform(keys[2 * i], (fout, fin),
                               minval=-bound, maxval=bound, dtype=jnp.float32)
        b = jax.random.uniform(keys[2 * i + 1], (fout,),
                               minval=-bound, maxval=bound, dtype=jnp.float32)
        params[f"w{i + 1}"] = w
        params[f"b{i + 1}"] = b

    # Pack all weights into one padded (4, 16, 16) block and all biases into
    # one (4, 16, 1) block (fewer tiny DMA operands, VMEM-resident across steps).
    w_stack = jnp.zeros((4, 16, 16), jnp.float32)
    w_stack = w_stack.at[0, :, 0:1].set(params["w1"])   # (16, 1)
    w_stack = w_stack.at[1].set(params["w2"])           # (16, 16)
    w_stack = w_stack.at[2].set(params["w3"])           # (16, 16)
    w_stack = w_stack.at[3, 0:2, :].set(params["w4"])   # (2, 16)

    b_stack = jnp.zeros((4, 16, 1), jnp.float32)
    b_stack = b_stack.at[0, :, 0].set(params["b1"])
    b_stack = b_stack.at[1, :, 0].set(params["b2"])
    b_stack = b_stack.at[2, :, 0].set(params["b3"])
    b_stack = b_stack.at[3, 0:2, 0].set(params["b4"])

    params["w_stack"] = w_stack
    params["b_stack"] = b_stack
    return params


def reference_forward(x, p):
    h = jnp.maximum(x @ p["w1"].T + p["b1"], 0.0)
    h = jnp.maximum(h @ p["w2"].T + p["b2"], 0.0)
    h = jnp.maximum(h @ p["w3"].T + p["b3"], 0.0)
    return h @ p["w4"].T + p["b4"]


if __name__ == "__main__":
    key = jax.random.PRNGKey(0)
    pkey, xkey1, xkey2 = jax.random.split(key, 3)
    params = init_params(pkey)

    # Small demo batch (pads to one 512-wide lane tile).
    B1 = 8
    x1 = jax.random.normal(xkey1, (B1, 1), dtype=jnp.float32)
    out1 = jax.block_until_ready(net_forward(x1, params))
    ref1 = reference_forward(x1, params)
    assert out1.shape == (B1, 2)
    assert jnp.allclose(out1, ref1, atol=1e-5, rtol=1e-5)

    # Tile-aligned batch: exercises the no-pad path and a 2-tile grid
    # (both v7x TensorCores active via the "parallel" batch axis).
    B2 = 1024
    x2 = jax.random.normal(xkey2, (B2, 1), dtype=jnp.float32)
    out2 = jax.block_until_ready(net_forward(x2, params))
    ref2 = reference_forward(x2, params)
    assert out2.shape == (B2, 2)
    assert jnp.allclose(out2, ref2, atol=1e-5, rtol=1e-5)

    print("KERNEL_OK")
</pallas_src>

<mosaic_0001>
module attributes {stable_mosaic.version = 11 : i64} {
  func.func @mlp_kernel(%arg0: i32, %arg1: memref<1x512xf32, #tpu.memory_space<vmem>>, %arg2: memref<4x16x16xf32, #tpu.memory_space<vmem>>, %arg3: memref<4x16x1xf32, #tpu.memory_space<vmem>>, %arg4: memref<2x512xf32, #tpu.memory_space<vmem>>) attributes {dimension_semantics = [#tpu.dimension_semantics<parallel>], iteration_bounds = array<i64: 1>, scalar_prefetch = 0 : i64, scratch_operands = 0 : i64, tpu.core_type = #tpu.core_type<tc>, window_params = [{transform_indices = @transform_0, window_bounds = array<i64: 1, 512>}, {pipeline_mode = #tpu.pipeline_mode<synchronous>, transform_indices = @transform_1, window_bounds = array<i64: 4, 16, 16>}, {pipeline_mode = #tpu.pipeline_mode<synchronous>, transform_indices = @transform_2, window_bounds = array<i64: 4, 16, 1>}, {transform_indices = @transform_3, window_bounds = array<i64: 2, 512>}]} {
    %c0 = arith.constant 0 : index
    %c0_0 = arith.constant 0 : index
    %0 = vector.load %arg1[%c0, %c0_0] : memref<1x512xf32, #tpu.memory_space<vmem>>, vector<1x512xf32>
    %c0_1 = arith.constant 0 : index
    %c0_2 = arith.constant 0 : index
    %c0_3 = arith.constant 0 : index
    %1 = vector.load %arg2[%c0_1, %c0_2, %c0_3] : memref<4x16x16xf32, #tpu.memory_space<vmem>>, vector<1x16x16xf32>
    %2 = vector.shape_cast %1 : vector<1x16x16xf32> to vector<16x16xf32>
    %3 = vector.extract_strided_slice %2 {offsets = [0, 0], sizes = [16, 1], strides = [1, 1]} : vector<16x16xf32> to vector<16x1xf32>
    %c0_4 = arith.constant 0 : index
    %c0_5 = arith.constant 0 : index
    %c0_6 = arith.constant 0 : index
    %4 = vector.load %arg3[%c0_4, %c0_5, %c0_6] : memref<4x16x1xf32, #tpu.memory_space<vmem>>, vector<1x16x1xf32>
    %5 = vector.shape_cast %4 : vector<1x16x1xf32> to vector<16x1xf32>
    %6 = vector.broadcast %3 : vector<16x1xf32> to vector<16x512xf32>
    %7 = vector.broadcast %0 : vector<1x512xf32> to vector<16x512xf32>
    %8 = arith.mulf %6, %7 : vector<16x512xf32>
    %9 = vector.broadcast %5 : vector<16x1xf32> to vector<16x512xf32>
    %10 = arith.addf %8, %9 : vector<16x512xf32>
    %cst = arith.constant 0.000000e+00 : f32
    %11 = vector.broadcast %cst : f32 to vector<16x512xf32>
    %12 = arith.maximumf %10, %11 : vector<16x512xf32>
    %c1 = arith.constant 1 : index
    %c0_7 = arith.constant 0 : index
    %c0_8 = arith.constant 0 : index
    %13 = vector.load %arg2[%c1, %c0_7, %c0_8] : memref<4x16x16xf32, #tpu.memory_space<vmem>>, vector<1x16x16xf32>
    %14 = vector.shape_cast %13 : vector<1x16x16xf32> to vector<16x16xf32>
    %cst_9 = arith.constant dense<0.000000e+00> : vector<16x512xf32>
    %15 = tpu.matmul %14, %12, %cst_9 {dimension_numbers = #tpu.dot_dimension_numbers<[1], [0], [0], [1], [0, 0, 1, 1], [], []>} : vector<16x16xf32>, vector<16x512xf32>, vector<16x512xf32> -> vector<16x512xf32>
    %c1_10 = arith.constant 1 : index
    %c0_11 = arith.constant 0 : index
    %c0_12 = arith.constant 0 : index
    %16 = vector.load %arg3[%c1_10, %c0_11, %c0_12] : memref<4x16x1xf32, #tpu.memory_space<vmem>>, vector<1x16x1xf32>
    %17 = vector.shape_cast %16 : vector<1x16x1xf32> to vector<16x1xf32>
    %18 = vector.broadcast %17 : vector<16x1xf32> to vector<16x512xf32>
    %19 = arith.addf %15, %18 : vector<16x512xf32>
    %cst_13 = arith.constant 0.000000e+00 : f32
    %20 = vector.broadcast %cst_13 : f32 to vector<16x512xf32>
    %21 = arith.maximumf %19, %20 : vector<16x512xf32>
    %c2 = arith.constant 2 : index
    %c0_14 = arith.constant 0 : index
    %c0_15 = arith.constant 0 : index
    %22 = vector.load %arg2[%c2, %c0_14, %c0_15] : memref<4x16x16xf32, #tpu.memory_space<vmem>>, vector<1x16x16xf32>
    %23 = vector.shape_cast %22 : vector<1x16x16xf32> to vector<16x16xf32>
    %cst_16 = arith.constant dense<0.000000e+00> : vector<16x512xf32>
    %24 = tpu.matmul %23, %21, %cst_16 {dimension_numbers = #tpu.dot_dimension_numbers<[1], [0], [0], [1], [0, 0, 1, 1], [], []>} : vector<16x16xf32>, vector<16x512xf32>, vector<16x512xf32> -> vector<16x512xf32>
    %c2_17 = arith.constant 2 : index
    %c0_18 = arith.constant 0 : index
    %c0_19 = arith.constant 0 : index
    %25 = vector.load %arg3[%c2_17, %c0_18, %c0_19] : memref<4x16x1xf32, #tpu.memory_space<vmem>>, vector<1x16x1xf32>
    %26 = vector.shape_cast %25 : vector<1x16x1xf32> to vector<16x1xf32>
    %27 = vector.broadcast %26 : vector<16x1xf32> to vector<16x512xf32>
    %28 = arith.addf %24, %27 : vector<16x512xf32>
    %cst_20 = arith.constant 0.000000e+00 : f32
    %29 = vector.broadcast %cst_20 : f32 to vector<16x512xf32>
    %30 = arith.maximumf %28, %29 : vector<16x512xf32>
    %c3 = arith.constant 3 : index
    %c0_21 = arith.constant 0 : index
    %c0_22 = arith.constant 0 : index
    %31 = vector.load %arg2[%c3, %c0_21, %c0_22] : memref<4x16x16xf32, #tpu.memory_space<vmem>>, vector<1x16x16xf32>
    %32 = vector.shape_cast %31 : vector<1x16x16xf32> to vector<16x16xf32>
    %33 = vector.extract_strided_slice %32 {offsets = [0, 0], sizes = [2, 16], strides = [1, 1]} : vector<16x16xf32> to vector<2x16xf32>
    %c3_23 = arith.constant 3 : index
    %c0_24 = arith.constant 0 : index
    %c0_25 = arith.constant 0 : index
    %34 = vector.load %arg3[%c3_23, %c0_24, %c0_25] : memref<4x16x1xf32, #tpu.memory_space<vmem>>, vector<1x16x1xf32>
    %35 = vector.shape_cast %34 : vector<1x16x1xf32> to vector<16x1xf32>
    %36 = vector.extract_strided_slice %35 {offsets = [0, 0], sizes = [2, 1], strides = [1, 1]} : vector<16x1xf32> to vector<2x1xf32>
    %cst_26 = arith.constant dense<0.000000e+00> : vector<2x512xf32>
    %37 = tpu.matmul %33, %30, %cst_26 {dimension_numbers = #tpu.dot_dimension_numbers<[1], [0], [0], [1], [0, 0, 1, 1], [], []>} : vector<2x16xf32>, vector<16x512xf32>, vector<2x512xf32> -> vector<2x512xf32>
    %38 = vector.broadcast %36 : vector<2x1xf32> to vector<2x512xf32>
    %39 = arith.addf %37, %38 : vector<2x512xf32>
    %c0_27 = arith.constant 0 : index
    %c0_28 = arith.constant 0 : index
    %40 = vector.load %arg4[%c0_27, %c0_28] : memref<2x512xf32, #tpu.memory_space<vmem>>, vector<2x512xf32>
    tpu.vector_store %arg4[%c0_27, %c0_28], %39 {strides = array<i32>} : memref<2x512xf32, #tpu.memory_space<vmem>>, vector<2x512xf32>,
    return
  }
  func.func @transform_0(%arg0: i32) -> (i32, i32) {
    %c0_i32 = arith.constant 0 : i32
    %c0_i32_0 = arith.constant 0 : i32
    return %c0_i32, %arg0 : i32, i32
  }
  func.func @transform_1(%arg0: i32) -> (i32, i32, i32) {
    %c0_i32 = arith.constant 0 : i32
    %c0_i32_0 = arith.constant 0 : i32
    %c0_i32_1 = arith.constant 0 : i32
    %c0_i32_2 = arith.constant 0 : i32
    return %c0_i32, %c0_i32_0, %c0_i32_1 : i32, i32, i32
  }
  func.func @transform_2(%arg0: i32) -> (i32, i32, i32) {
    %c0_i32 = arith.constant 0 : i32
    %c0_i32_0 = arith.constant 0 : i32
    %c0_i32_1 = arith.constant 0 : i32
    %c0_i32_2 = arith.constant 0 : i32
    return %c0_i32, %c0_i32_0, %c0_i32_1 : i32, i32, i32
  }
  func.func @transform_3(%arg0: i32) -> (i32, i32) {
    %c0_i32 = arith.constant 0 : i32
    %c0_i32_0 = arith.constant 0 : i32
    return %c0_i32, %arg0 : i32, i32
  }
}

</mosaic_0001>

<bundles_post_ra>
// kernel: net_forward.1
= control target key start
LH: loop header
LB: loop body
LE: loop exit
PB: predicated region body
PF: predicated region fallthrough
CT: control target
= control target key end

     0   :  { %v683_v0 = vmov 0   ;;  %v684_v10 = vmov 0.0   ;;  %v30_v11 = vlaneseq  ;;  %vm100_vm0 = vcmask 130048   ;;  %s781_s2 = inlined_call_operand.vmem [shape: f32[4,16,1], index: 2, kind: input, shape index: {}]   ;;  %s782_s1 = inlined_call_operand.vmem [shape: f32[4,16,16], index: 1, kind: input, shape index: {}]   ;;  %s783_s0 = inlined_call_operand.vmem [shape: f32[1,512], index: 0, kind: input, shape index: {}]   ;;  %s784_s3 = inlined_call_operand.vmem [shape: f32[2,512], index: 3, kind: output, shape index: {}]  }
   0x1   :  { %682 = vset.pattern.permute.xlu1 %v683_v0  ;;  %681 = vset.pattern.permute.xlu0 %v683_v0  ;;  %v17_v1 = vld [vmem:[%s781_s2] sm:$0xff]  ;;  %v18_v3 = vld [vmem:[%s781_s2 + $0x8] sm:$0xff]  ;;  %v637_v5 = vld [vmem:[%s781_s2 + $0x18] sm:$0xff] }
   0x2   :  { %v15_v2 = vld [vmem:[%s782_s1] sm:$0xff]  ;;  %60 = vperm.xlu1 %682, %v17_v1   ;;  %v16_v4 = vld [vmem:[%s782_s1 + $0x8] sm:$0xff]  ;;  %v636_v6 = vld [vmem:[%s781_s2 + $0x10] sm:$0xff]  ;;  %171 = vmatprep.mubr.f32.mxu0 %v684_v10  ;;  %v735_v12 = vshrl.u32 %v30_v11, 7 }
   0x3   :  { %21 = vperm.xlu0 %681, %v15_v2   ;;  %v645_v7 = vld [vmem:[%s781_s2 + $0x28] sm:$0xff]  ;;  %v644_v8 = vld [vmem:[%s781_s2 + $0x20] sm:$0xff]  ;;  %v651_v9 = vld [vmem:[%s781_s2 + $0x30] sm:$0xff]  ;;  %248 = vmatprep.mubr.f32.mxu1 %v684_v10 }
   0x4   :  { %v32_v13 = vsub.s32 0, %v735_v12  ;;  %v40_v14 = vsub.s32 2, %v735_v12  ;;  %v36_v15 = vsub.s32 1, %v735_v12  ;;  %v14_v16 = vld [vmem:[%s783_s0] sm:$0xf]  ;;  %v44_v17 = vsub.s32 3, %v735_v12 }
   0x5   :  { %v634_v54 = vld [vmem:[%s782_s1 + $0x10] sm:$0xff]  ;;  %v635_v55 = vld [vmem:[%s782_s1 + $0x18] sm:$0xff] }
   0x6   :  { %65 = vperm.xlu1 %682, %v18_v3   ;;  %v33_v18 = vrot.slane %v14_v16, %v32_v13  ;;  %v41_v19 = vrot.slane %v14_v16, %v40_v14  ;;  %v37_v20 = vrot.slane %v14_v16, %v36_v15  ;;  %v45_v21 = vrot.slane %v14_v16, %v44_v17 }
   0x7   :  { %26 = vperm.xlu0 %681, %v16_v4  }
   0xa   :  { %97 = vperm.xlu1 %682, %v637_v5  }
   0xb   :  { %92 = vperm.xlu0 %681, %v636_v6  }
   0xe   :  { %282 = vperm.xlu1 %682, %v645_v7  }
   0xf   :  { %277 = vperm.xlu0 %681, %v644_v8  }
  0x13   :  { %459 = vperm.xlu0 %681, %v651_v9  }
  0x81   :  { %v61_v22 = vpop.permute.xlu1 %60 }
  0x82   :  { %v22_v23 = vpop.permute.xlu0 %21 }
  0x83   :  { %v50_v24 = vmul.f32 %v33_v18, %v22_v23  ;;  %v52_v25 = vmul.f32 %v41_v19, %v22_v23  ;;  %v51_v26 = vmul.f32 %v37_v20, %v22_v23  ;;  %v53_v27 = vmul.f32 %v45_v21, %v22_v23 }
  0x85   :  { %v69_v29 = vadd.f32 %v61_v22, %v51_v26  ;;  %v68_v30 = vadd.f32 %v61_v22, %v50_v24  ;;  %v70_v34 = vadd.f32 %v61_v22, %v52_v25  ;;  %v66_v35 = vpop.permute.xlu1 %65  ;;  %v71_v37 = vadd.f32 %v61_v22, %v53_v27  ;;  %v642_v24 = vld [vmem:[%s782_s1 + $0x20] sm:$0xff]  ;;  %v643_v25 = vld [vmem:[%s782_s1 + $0x28] sm:$0xff] }
  0x86   :  { %v27_v28 = vpop.permute.xlu0 %26 }
  0x87   :  { %v54_v31 = vmul.f32 %v33_v18, %v27_v28  ;;  %v56_v32 = vmul.f32 %v41_v19, %v27_v28  ;;  %v55_v33 = vmul.f32 %v37_v20, %v27_v28  ;;  %v57_v36 = vmul.f32 %v45_v21, %v27_v28 }
  0x88   :  { %v77_v41 = vmax.f32 %v69_v29, 0.0  ;;  %v76_v43 = vmax.f32 %v68_v30, 0.0  ;;  %v78_v46 = vmax.f32 %v70_v34, 0.0  ;;  %v79_v48 = vmax.f32 %v71_v37, 0.0 }
  0x89   :  { %v73_v38 = vadd.f32 %v66_v35, %v55_v33  ;;  %v72_v39 = vadd.f32 %v66_v35, %v54_v31  ;;  %v74_v40 = vadd.f32 %v66_v35, %v56_v32  ;;  %v75_v42 = vadd.f32 %v66_v35, %v57_v36  ;;  %v98_v62 = vpop.permute.xlu1 %97 }
  0x8a   :  { %v93_v59 = vpop.permute.xlu0 %92 }
  0x8b   :  { %v81_v44 = vmax.f32 %v73_v38, 0.0  ;;  %v80_v45 = vmax.f32 %v72_v39, 0.0  ;;  %v82_v47 = vmax.f32 %v74_v40, 0.0  ;;  %v83_v49 = vmax.f32 %v75_v42, 0.0 }
  0x8d   :  { %v654_v50 = vpack.c.bf16 %v81_v44, %v77_v41  ;;  %v656_v51 = vpack.c.bf16 %v80_v45, %v76_v43  ;;  %v660_v52 = vpack.c.bf16 %v82_v47, %v78_v46  ;;  %v658_v53 = vpack.c.bf16 %v83_v49, %v79_v48  ;;  %v283_v32 = vpop.permute.xlu1 %282 }
  0x8e   :  { %v278_v29 = vpop.permute.xlu0 %277 }
  0x8f   :  { %655 = vmatprep.subr.bf16.mxu0 %v654_v50  ;;  %659 = vmatprep.subr.bf16.mxu1 %v658_v53 }
  0x90   :  { %657 = vmatpush1.bf16.msra.mxu0 %v656_v51  ;;  %661 = vmatpush1.bf16.msra.mxu1 %v660_v52 }
  0x93   :  { %638 = vmatmul.mubr.msk.f32.vlgmr.msra.gmra.mrb[0].mxu0 %vm100_vm0, %v634_v54  ;;  %640 = vmatmul.mubr.msk.f32.vlgmr.msra.gmra.mrb[0].mxu1 %vm100_vm0, %v634_v54 }
  0x94   :  { %177 = vmatprep.mubr.f32.mxu0 %v684_v10  ;;  %254 = vmatprep.mubr.f32.mxu1 %v684_v10 }
  0x97   :  { %639 = vmatmul.mubr.msk.f32.gmra.mrb[2].mxu0 %vm100_vm0, %v635_v55  ;;  %641 = vmatmul.mubr.msk.f32.gmra.mrb[2].mxu1 %vm100_vm0, %v635_v55  ;;  %v650_v55 = vld [vmem:[%s782_s1 + $0x30] sm:$0xff] }
  0x98   :  { %355 = vmatprep.mubr.f32.mxu0 %v684_v10  ;;  %432 = vmatprep.mubr.f32.mxu1 %v684_v10 }
 0x166   :  { %v173_v56 = vpop.f32.mrb[0].mxu0  ;;  %v250_v57 = vpop.f32.mrb[0].mxu1 }
 0x167   :  { %v175_v58 = vpop.f32.mrb[1].mxu0  ;;  %v252_v60 = vpop.f32.mrb[1].mxu1  ;;  %v174_v61 = vadd.f32 %v173_v56, %v93_v59  ;;  %v251_v63 = vadd.f32 %v250_v57, %v93_v59  ;;  %v685_v56 = vmov 1983009808  }
 0x168   :  { %v176_v0 = vadd.f32 %v175_v58, %v93_v59  ;;  %v253_v2 = vadd.f32 %v252_v60, %v93_v59  ;;  %v614_v57 = vunpack.c.l.s4 %v685_v56  ;;  %v460_v59 = vpop.permute.xlu0 %459 }
 0x169   :  { %v261_v9 = vmax.f32 %v174_v61, 0.0  ;;  %v263_v14 = vmax.f32 %v251_v63, 0.0 }
 0x16a   :  { %v179_v1 = vpop.f32.mrb[2].mxu0  ;;  %v256_v4 = vpop.f32.mrb[2].mxu1  ;;  %v262_v15 = vmax.f32 %v176_v0, 0.0  ;;  %v264_v18 = vmax.f32 %v253_v2, 0.0  ;;  %v615_v58 = vunpack.c.0.s8 %v614_v57 }
 0x16b   :  { %v180_v3 = vadd.f32 %v179_v1, %v98_v62  ;;  %v181_v5 = vpop.f32.mrb[3].mxu0  ;;  %v257_v6 = vadd.f32 %v256_v4, %v98_v62  ;;  %v258_v8 = vpop.f32.mrb[3].mxu1 }
 0x16c   :  { %v182_v7 = vadd.f32 %v181_v5, %v98_v62  ;;  %v259_v13 = vadd.f32 %v258_v8, %v98_v62  ;;  %v618_v2 = vsub.s32 %v615_v58, %v735_v12 }
 0x16d   :  { %v265_v11 = vmax.f32 %v180_v3, 0.0  ;;  %v267_v16 = vmax.f32 %v257_v6, 0.0 }
 0x16e   :  { %v266_v17 = vmax.f32 %v182_v7, 0.0  ;;  %v268_v20 = vmax.f32 %v259_v13, 0.0 }
 0x16f   :  { %v664_v19 = vpack.c.bf16 %v265_v11, %v261_v9  ;;  %v668_v21 = vpack.c.bf16 %v267_v16, %v263_v14 }
 0x170   :  { %v662_v22 = vpack.c.bf16 %v266_v17, %v262_v15  ;;  %v666_v23 = vpack.c.bf16 %v268_v20, %v264_v18 }
 0x172   :  { %663 = vmatprep.subr.bf16.mxu0 %v662_v22  ;;  %667 = vmatprep.subr.bf16.mxu1 %v666_v23 }
 0x173   :  { %665 = vmatpush1.bf16.msra.mxu0 %v664_v19  ;;  %669 = vmatpush1.bf16.msra.mxu1 %v668_v21 }
 0x176   :  { %646 = vmatmul.mubr.msk.f32.vlgmr.msra.gmra.mrb[4].mxu0 %vm100_vm0, %v642_v24  ;;  %648 = vmatmul.mubr.msk.f32.vlgmr.msra.gmra.mrb[4].mxu1 %vm100_vm0, %v642_v24 }
 0x177   :  { %361 = vmatprep.mubr.f32.mxu0 %v684_v10  ;;  %438 = vmatprep.mubr.f32.mxu1 %v684_v10 }
 0x17a   :  { %647 = vmatmul.mubr.msk.f32.gmra.mrb[6].mxu0 %vm100_vm0, %v643_v25  ;;  %649 = vmatmul.mubr.msk.f32.gmra.mrb[6].mxu1 %vm100_vm0, %v643_v25 }
 0x17b   :  { %529 = vmatprep.mubr.f32.mxu0 %v684_v10  ;;  %600 = vmatprep.mubr.f32.mxu1 %v684_v10 }
 0x249   :  { %v357_v26 = vpop.f32.mrb[4].mxu0  ;;  %v434_v27 = vpop.f32.mrb[4].mxu1 }
 0x24a   :  { %v359_v28 = vpop.f32.mrb[5].mxu0  ;;  %v436_v30 = vpop.f32.mrb[5].mxu1  ;;  %v358_v31 = vadd.f32 %v357_v26, %v278_v29  ;;  %v435_v33 = vadd.f32 %v434_v27, %v278_v29 }
 0x24b   :  { %v360_v34 = vadd.f32 %v359_v28, %v278_v29  ;;  %v437_v36 = vadd.f32 %v436_v30, %v278_v29 }
 0x24c   :  { %v445_v43 = vmax.f32 %v358_v31, 0.0  ;;  %v447_v45 = vmax.f32 %v435_v33, 0.0 }
 0x24d   :  { %v363_v35 = vpop.f32.mrb[6].mxu0  ;;  %v440_v38 = vpop.f32.mrb[6].mxu1  ;;  %v446_v46 = vmax.f32 %v360_v34, 0.0  ;;  %v448_v49 = vmax.f32 %v437_v36, 0.0 }
 0x24e   :  { %v364_v37 = vadd.f32 %v363_v35, %v283_v32  ;;  %v365_v39 = vpop.f32.mrb[7].mxu0  ;;  %v441_v40 = vadd.f32 %v440_v38, %v283_v32  ;;  %v442_v42 = vpop.f32.mrb[7].mxu1 }
 0x24f   :  { %v366_v41 = vadd.f32 %v365_v39, %v283_v32  ;;  %v443_v10 = vadd.f32 %v442_v42, %v283_v32 }
 0x250   :  { %v449_v44 = vmax.f32 %v364_v37, 0.0  ;;  %v451_v47 = vmax.f32 %v441_v40, 0.0 }
 0x251   :  { %v450_v48 = vmax.f32 %v366_v41, 0.0  ;;  %v452_v51 = vmax.f32 %v443_v10, 0.0 }
 0x252   :  { %v672_v50 = vpack.c.bf16 %v449_v44, %v445_v43  ;;  %v676_v52 = vpack.c.bf16 %v451_v47, %v447_v45 }
 0x253   :  { %v670_v53 = vpack.c.bf16 %v450_v48, %v446_v46  ;;  %v674_v54 = vpack.c.bf16 %v452_v51, %v448_v49 }
 0x255   :  { %671 = vmatprep.subr.bf16.mxu0 %v670_v53  ;;  %675 = vmatprep.subr.bf16.mxu1 %v674_v54 }
 0x256   :  { %673 = vmatpush1.bf16.msra.mxu0 %v672_v50  ;;  %677 = vmatpush1.bf16.msra.mxu1 %v676_v52 }
 0x259   :  { %652 = vmatmul.mubr.msk.f32.vlgmr.msra.gmra.mrb[8].mxu0 %vm100_vm0, %v650_v55  ;;  %653 = vmatmul.mubr.msk.f32.vlgmr.msra.gmra.mrb[8].mxu1 %vm100_vm0, %v650_v55 }
 0x32c   :  { %v531_v60 = vpop.f32.mrb[8].mxu0  ;;  %v602_v62 = vpop.f32.mrb[8].mxu1 }
 0x32d   :  { %v532_v61 = vadd.f32 %v531_v60, %v460_v59  ;;  %v533_v63 = vpop.f32.mrb[9].mxu0  ;;  %v603_v0 = vadd.f32 %v602_v62, %v460_v59  ;;  %v604_v3 = vpop.f32.mrb[9].mxu1 }
 0x32e   :  { %v534_v1 = vadd.f32 %v533_v63, %v460_v59  ;;  %v605_v4 = vadd.f32 %v604_v3, %v460_v59 }
 0x330   :  { %v611_v5 = vcombine.low %v532_v61, %v534_v1  ;;  %v612_v6 = vcombine.low %v603_v0, %v605_v4 }
 0x332   :  { %v619_v7 = vrot.slane %v611_v5, %v618_v2  ;;  %v626_v8 = vrot.slane %v612_v6, %v618_v2 }
 0x334   :  { %v627_v9 = vcombine.low %v619_v7, %v626_v8 }
 0x336   :  { %629 = vst [vmem:[%s784_s3] sm:$0xff] %v627_v9 }

</bundles_post_ra>
